<compile_context>
chip_gen: v7x
topology: tpu7x:2x2x1
jax: 0.10.0
libtpu: 0.0.40
codegen_flags: <defaults>
</compile_context>

<pallas_src>
import jax
import jax.numpy as jnp
from jax.experimental import pallas as pl
from jax.experimental.pallas import tpu as pltpu


LEAKY_SLOPE = 0.01  # torch.nn.LeakyReLU default negative_slope


def _lrelu(v):
    return jnp.where(v > 0, v, LEAKY_SLOPE * v)


# ---------------------------------------------------------------------------
# Fused kernel: both HypernetWeight MLPs in one body, lane-stacked to width 2H.
#
# Packed parameter layout (columns [0:H] = mu_w net, [H:2H] = mu_b net):
#   w_in  : (3, 2H)        rows = f1.w, f3.w, f5.w        (lane-stacked (1,H)+(1,H))
#   w_hh  : (8, 2H, 2H)    block-diagonal slabs:
#                          0: f2   1: f4 bottom (h2 half)   2: f6 bottom (h3 half)
#                          3: f4 top (chain half)           4: f6 top
#                          5: f7   6: f8   7: f9
#   b_all : (9, 2H)        rows = b1, b3, b5, b2, b4, b6, b7, b8, b9 (lane-stacked)
#   w_out : (2H, Dpad)     [:H, :d_w] = mu_w out.w, [H:, d_w:d_w+d_b] = mu_b out.w,
#                          remaining (padding) columns zero
#   b_out : (1, Dpad)      lane-stacked output biases, zero padding tail
# ---------------------------------------------------------------------------
def fused_hypernet_kernel(z_ref, w_in_ref, w_hh_ref, b_ref, w_out_ref, b_out_ref,
                          out_ref):
    x1 = z_ref[:, 0:1]
    x2 = z_ref[:, 1:2]
    x3 = z_ref[:, 2:3]

    # Input layers f1/f3/f5 of BOTH nets at once (input dim 1 -> broadcast multiply).
    a1 = _lrelu(x1 * w_in_ref[0:1, :] + b_ref[0:1, :])    # act(f1)  slab (K, 2H)
    ah2 = _lrelu(x2 * w_in_ref[1:2, :] + b_ref[1:2, :])   # act(f3)  slab
    ah3 = _lrelu(x3 * w_in_ref[2:3, :] + b_ref[2:3, :])   # act(f5)  slab

    # Off-chain partials for the f4/f6 "cat" halves — depend only on z, so they are
    # issued here and hide under the serial chain below (MXU has huge slack).
    t4b = jnp.dot(ah2, w_hh_ref[1], preferred_element_type=jnp.float32)
    t6b = jnp.dot(ah3, w_hh_ref[2], preferred_element_type=jnp.float32)

    # Serial chain (one block-diagonal dot per layer, covers both nets).
    w = jnp.dot(a1, w_hh_ref[0], preferred_element_type=jnp.float32) + b_ref[3:4, :]   # f2
    w = _lrelu(w)
    w = jnp.dot(w, w_hh_ref[3], preferred_element_type=jnp.float32) + t4b + b_ref[4:5, :]  # f4
    w = _lrelu(w)
    w = jnp.dot(w, w_hh_ref[4], preferred_element_type=jnp.float32) + t6b + b_ref[5:6, :]  # f6
    w = _lrelu(w)
    w = jnp.dot(w, w_hh_ref[5], preferred_element_type=jnp.float32) + b_ref[6:7, :]    # f7
    w = _lrelu(w)
    w = jnp.dot(w, w_hh_ref[6], preferred_element_type=jnp.float32) + b_ref[7:8, :]    # f8
    w = _lrelu(w)
    w = jnp.dot(w, w_hh_ref[7], preferred_element_type=jnp.float32) + b_ref[8:9, :]    # f9
    w = _lrelu(w)

    # Output layers of both nets as ONE block-diagonal dot -> single lane-dense,
    # 128-aligned unmasked store of the full padded output slab.
    out_ref[...] = (jnp.dot(w, w_out_ref[...], preferred_element_type=jnp.float32)
                    + b_out_ref[...])


def single_hyper_network(z, packed, d_w, d_b):
    """SingleHyperNetwork.forward: returns (K, d_w + d_b) = cat([mu_w, mu_b])."""
    K = z.shape[0]
    D = d_w + d_b
    H2 = packed[0].shape[1]          # 2 * h_units
    Dpad = packed[-1].shape[1]       # D rounded up to a multiple of 128

    # Advisory cost: 8 block-diagonal (2H,2H) dots + the padded output dot.
    flops = 2 * K * (8 * H2 * H2 + H2 * Dpad)
    bytes_accessed = (z.size * z.dtype.itemsize
                      + sum(a.size * a.dtype.itemsize for a in packed)
                      + K * Dpad * 4)

    # Everything fits VMEM trivially here (~(8*(2H)^2 + 2H*Dpad + K*Dpad)*4 B);
    # if H or d_w grow, tile the Dpad/w_out columns with a grid and re-derive
    # against 64 MiB on v7x (vs 128 MiB on v5e/v6e).
    vmem_spec = pl.BlockSpec(memory_space=pltpu.MemorySpace.VMEM)
    out = pl.pallas_call(
        fused_hypernet_kernel,
        in_specs=[vmem_spec] * (1 + len(packed)),
        out_specs=vmem_spec,
        out_shape=jax.ShapeDtypeStruct((K, Dpad), jnp.float32),
        cost_estimate=pl.CostEstimate(flops=flops, transcendentals=0,
                                      bytes_accessed=bytes_accessed),
    )(z, *packed)
    return out[:, :D]                # drop zero-padded columns (layout plumbing)


# ---------------------------------------------------------------------------
# Parameter construction (deterministic, synthetic) + block-diagonal packing.
# ---------------------------------------------------------------------------
def _xavier_uniform(key, fan_in, fan_out):
    """Weight in (in, out) layout (already transposed for x @ W)."""
    limit = jnp.sqrt(6.0 / (fan_in + fan_out))
    return jax.random.uniform(key, (fan_in, fan_out), jnp.float32, -limit, limit)


def make_hypernet_params(key, h_units, out_dim):
    """One HypernetWeight's parameters in natural (in, out) layout."""
    H = h_units
    keys = jax.random.split(key, 10)
    zeros = lambda n: jnp.zeros((1, n), jnp.float32)
    return dict(
        w1=_xavier_uniform(keys[0], 1, H), b1=zeros(H),
        w2=_xavier_uniform(keys[1], H, H), b2=zeros(H),
        w3=_xavier_uniform(keys[2], 1, H), b3=zeros(H),
        w4=_xavier_uniform(keys[3], 2 * H, H), b4=zeros(H),
        w5=_xavier_uniform(keys[4], 1, H), b5=zeros(H),
        w6=_xavier_uniform(keys[5], 2 * H, H), b6=zeros(H),
        w7=_xavier_uniform(keys[6], H, H), b7=zeros(H),
        w8=_xavier_uniform(keys[7], H, H), b8=zeros(H),
        w9=_xavier_uniform(keys[8], H, H), b9=zeros(H),
        # TODO(synk): hyperfan_in_W_init / hyperfan_in_b_init are not provided in the
        # source; using a deterministic xavier-style init for the output layer instead.
        wout=_xavier_uniform(keys[9], H, out_dim), bout=zeros(out_dim),
    )


def pack_params(p_w, p_b, d_w, d_b, d_pad):
    """Pack both nets' params into the 5 lane-stacked / block-diagonal kernel inputs."""
    H = p_w['w2'].shape[0]

    def bd(a, b):
        """Block-diagonal stack of two (r, c) matrices -> (2r, 2c)."""
        r, c = a.shape
        m = jnp.zeros((2 * r, 2 * c), jnp.float32)
        return m.at[:r, :c].set(a).at[r:, c:].set(b)

    def lane(a, b):
        """Lane-stack two (1, X) rows -> (1, 2X)."""
        return jnp.concatenate([a, b], axis=1)

    w_in = jnp.concatenate([lane(p_w['w1'], p_b['w1']),
                            lane(p_w['w3'], p_b['w3']),
                            lane(p_w['w5'], p_b['w5'])], axis=0)              # (3, 2H)

    w_hh = jnp.stack([
        bd(p_w['w2'], p_b['w2']),                 # 0: f2
        bd(p_w['w4'][H:], p_b['w4'][H:]),         # 1: f4 bottom (h2 half)
        bd(p_w['w6'][H:], p_b['w6'][H:]),         # 2: f6 bottom (h3 half)
        bd(p_w['w4'][:H], p_b['w4'][:H]),         # 3: f4 top (chain half)
        bd(p_w['w6'][:H], p_b['w6'][:H]),         # 4: f6 top (chain half)
        bd(p_w['w7'], p_b['w7']),                 # 5: f7
        bd(p_w['w8'], p_b['w8']),                 # 6: f8
        bd(p_w['w9'], p_b['w9']),                 # 7: f9
    ], axis=0)                                                                # (8, 2H, 2H)

    b_all = jnp.concatenate([
        lane(p_w['b1'], p_b['b1']),
        lane(p_w['b3'], p_b['b3']),
        lane(p_w['b5'], p_b['b5']),
        lane(p_w['b2'], p_b['b2']),
        lane(p_w['b4'], p_b['b4']),
        lane(p_w['b6'], p_b['b6']),
        lane(p_w['b7'], p_b['b7']),
        lane(p_w['b8'], p_b['b8']),
        lane(p_w['b9'], p_b['b9']),
    ], axis=0)                                                                # (9, 2H)

    # Output layer: block-diagonal + zero-padded to a multiple of 128 lanes.
    w_out = jnp.zeros((2 * H, d_pad), jnp.float32)
    w_out = w_out.at[:H, :d_w].set(p_w['wout'])
    w_out = w_out.at[H:, d_w:d_w + d_b].set(p_b['wout'])
    b_out = jnp.zeros((1, d_pad), jnp.float32)
    b_out = b_out.at[:, :d_w].set(p_w['bout'])
    b_out = b_out.at[:, d_w:d_w + d_b].set(p_b['bout'])
    return (w_in, w_hh, b_all, w_out, b_out)


# ---------------------------------------------------------------------------
# Pure-JAX reference (mirrors the PyTorch forward exactly) for validation.
# ---------------------------------------------------------------------------
def hypernet_ref(z, p):
    x1, x2, x3 = z[:, 0:1], z[:, 1:2], z[:, 2:3]
    w = x1 @ p['w1'] + p['b1']
    w = _lrelu(w)
    w = w @ p['w2'] + p['b2']
    w2 = x2 @ p['w3'] + p['b3']
    w = jnp.concatenate([w, w2], axis=-1)
    w = _lrelu(w)
    w = w @ p['w4'] + p['b4']
    w3 = x3 @ p['w5'] + p['b5']
    w = jnp.concatenate([w, w3], axis=-1)
    w = _lrelu(w)
    w = w @ p['w6'] + p['b6']
    w = _lrelu(w)
    w = w @ p['w7'] + p['b7']
    w = _lrelu(w)
    w = w @ p['w8'] + p['b8']
    w = _lrelu(w)
    w = w @ p['w9'] + p['b9']
    w = _lrelu(w)
    return w @ p['wout'] + p['bout']


if __name__ == "__main__":
    # Small shapes consistent with the module (forward uses z[:, 0:3]).
    K = 8
    noise_dim = 4
    in_units = 16
    out_units = 8
    h_units = 32

    key = jax.random.PRNGKey(0)
    kz, kw, kb = jax.random.split(key, 3)
    z = jax.random.normal(kz, (K, noise_dim), jnp.float32)

    d_w = out_units * in_units        # prod((out_units, in_units))
    d_b = out_units                   # prod((out_units,))
    D = d_w + d_b
    d_pad = ((D + 127) // 128) * 128  # lane-align the packed output

    p_w = make_hypernet_params(kw, h_units, d_w)
    p_b = make_hypernet_params(kb, h_units, d_b)
    packed = pack_params(p_w, p_b, d_w, d_b, d_pad)

    mu = single_hyper_network(z, packed, d_w, d_b)
    mu = jax.block_until_ready(mu)
    assert mu.shape == (K, D), mu.shape

    # Validate against the pure-JAX mirror of the PyTorch forward.
    ref = jnp.concatenate([hypernet_ref(z, p_w), hypernet_ref(z, p_b)], axis=-1)
    assert jnp.allclose(mu, ref, atol=1e-4, rtol=1e-4), float(jnp.max(jnp.abs(mu - ref)))

    print("KERNEL_OK")
</pallas_src>

<mosaic_0001>
module attributes {stable_mosaic.version = 11 : i64} {
  func.func @fused_hypernet_kernel(%arg0: memref<8x4xf32, #tpu.memory_space<vmem>>, %arg1: memref<3x64xf32, #tpu.memory_space<vmem>>, %arg2: memref<8x64x64xf32, #tpu.memory_space<vmem>>, %arg3: memref<9x64xf32, #tpu.memory_space<vmem>>, %arg4: memref<64x256xf32, #tpu.memory_space<vmem>>, %arg5: memref<1x256xf32, #tpu.memory_space<vmem>>, %arg6: memref<8x256xf32, #tpu.memory_space<vmem>>) attributes {dimension_semantics = [], scalar_prefetch = 0 : i64, scratch_operands = 0 : i64, tpu.core_type = #tpu.core_type<tc>} {
    %c0 = arith.constant 0 : index
    %c0_0 = arith.constant 0 : index
    %0 = vector.load %arg0[%c0, %c0_0] : memref<8x4xf32, #tpu.memory_space<vmem>>, vector<8x1xf32>
    %c0_1 = arith.constant 0 : index
    %c1 = arith.constant 1 : index
    %1 = vector.load %arg0[%c0_1, %c1] : memref<8x4xf32, #tpu.memory_space<vmem>>, vector<8x1xf32>
    %c0_2 = arith.constant 0 : index
    %c2 = arith.constant 2 : index
    %2 = vector.load %arg0[%c0_2, %c2] : memref<8x4xf32, #tpu.memory_space<vmem>>, vector<8x1xf32>
    %c0_3 = arith.constant 0 : index
    %c0_4 = arith.constant 0 : index
    %3 = vector.load %arg1[%c0_3, %c0_4] : memref<3x64xf32, #tpu.memory_space<vmem>>, vector<1x64xf32>
    %4 = vector.broadcast %0 : vector<8x1xf32> to vector<8x64xf32>
    %5 = vector.broadcast %3 : vector<1x64xf32> to vector<8x64xf32>
    %6 = arith.mulf %4, %5 : vector<8x64xf32>
    %c0_5 = arith.constant 0 : index
    %c0_6 = arith.constant 0 : index
    %7 = vector.load %arg3[%c0_5, %c0_6] : memref<9x64xf32, #tpu.memory_space<vmem>>, vector<1x64xf32>
    %8 = vector.broadcast %7 : vector<1x64xf32> to vector<8x64xf32>
    %9 = arith.addf %6, %8 : vector<8x64xf32>
    %cst = arith.constant 0.000000e+00 : f32
    %10 = vector.broadcast %cst : f32 to vector<8x64xf32>
    %11 = arith.cmpf ogt, %9, %10 : vector<8x64xf32>
    %cst_7 = arith.constant 0.00999999977 : f32
    %12 = vector.broadcast %cst_7 : f32 to vector<8x64xf32>
    %13 = arith.mulf %12, %9 : vector<8x64xf32>
    %14 = arith.select %11, %9, %13 : vector<8x64xi1>, vector<8x64xf32>
    %c1_8 = arith.constant 1 : index
    %c0_9 = arith.constant 0 : index
    %15 = vector.load %arg1[%c1_8, %c0_9] : memref<3x64xf32, #tpu.memory_space<vmem>>, vector<1x64xf32>
    %16 = vector.broadcast %1 : vector<8x1xf32> to vector<8x64xf32>
    %17 = vector.broadcast %15 : vector<1x64xf32> to vector<8x64xf32>
    %18 = arith.mulf %16, %17 : vector<8x64xf32>
    %c1_10 = arith.constant 1 : index
    %c0_11 = arith.constant 0 : index
    %19 = vector.load %arg3[%c1_10, %c0_11] : memref<9x64xf32, #tpu.memory_space<vmem>>, vector<1x64xf32>
    %20 = vector.broadcast %19 : vector<1x64xf32> to vector<8x64xf32>
    %21 = arith.addf %18, %20 : vector<8x64xf32>
    %cst_12 = arith.constant 0.000000e+00 : f32
    %22 = vector.broadcast %cst_12 : f32 to vector<8x64xf32>
    %23 = arith.cmpf ogt, %21, %22 : vector<8x64xf32>
    %cst_13 = arith.constant 0.00999999977 : f32
    %24 = vector.broadcast %cst_13 : f32 to vector<8x64xf32>
    %25 = arith.mulf %24, %21 : vector<8x64xf32>
    %26 = arith.select %23, %21, %25 : vector<8x64xi1>, vector<8x64xf32>
    %c2_14 = arith.constant 2 : index
    %c0_15 = arith.constant 0 : index
    %27 = vector.load %arg1[%c2_14, %c0_15] : memref<3x64xf32, #tpu.memory_space<vmem>>, vector<1x64xf32>
    %28 = vector.broadcast %2 : vector<8x1xf32> to vector<8x64xf32>
    %29 = vector.broadcast %27 : vector<1x64xf32> to vector<8x64xf32>
    %30 = arith.mulf %28, %29 : vector<8x64xf32>
    %c2_16 = arith.constant 2 : index
    %c0_17 = arith.constant 0 : index
    %31 = vector.load %arg3[%c2_16, %c0_17] : memref<9x64xf32, #tpu.memory_space<vmem>>, vector<1x64xf32>
    %32 = vector.broadcast %31 : vector<1x64xf32> to vector<8x64xf32>
    %33 = arith.addf %30, %32 : vector<8x64xf32>
    %cst_18 = arith.constant 0.000000e+00 : f32
    %34 = vector.broadcast %cst_18 : f32 to vector<8x64xf32>
    %35 = arith.cmpf ogt, %33, %34 : vector<8x64xf32>
    %cst_19 = arith.constant 0.00999999977 : f32
    %36 = vector.broadcast %cst_19 : f32 to vector<8x64xf32>
    %37 = arith.mulf %36, %33 : vector<8x64xf32>
    %38 = arith.select %35, %33, %37 : vector<8x64xi1>, vector<8x64xf32>
    %c1_20 = arith.constant 1 : index
    %c0_21 = arith.constant 0 : index
    %c0_22 = arith.constant 0 : index
    %39 = vector.load %arg2[%c1_20, %c0_21, %c0_22] : memref<8x64x64xf32, #tpu.memory_space<vmem>>, vector<1x64x64xf32>
    %40 = vector.shape_cast %39 : vector<1x64x64xf32> to vector<64x64xf32>
    %cst_23 = arith.constant dense<0.000000e+00> : vector<8x64xf32>
    %41 = tpu.matmul %26, %40, %cst_23 {dimension_numbers = #tpu.dot_dimension_numbers<[1], [0], [0], [1], [0, 0, 1, 1], [], []>} : vector<8x64xf32>, vector<64x64xf32>, vector<8x64xf32> -> vector<8x64xf32>
    %c2_24 = arith.constant 2 : index
    %c0_25 = arith.constant 0 : index
    %c0_26 = arith.constant 0 : index
    %42 = vector.load %arg2[%c2_24, %c0_25, %c0_26] : memref<8x64x64xf32, #tpu.memory_space<vmem>>, vector<1x64x64xf32>
    %43 = vector.shape_cast %42 : vector<1x64x64xf32> to vector<64x64xf32>
    %cst_27 = arith.constant dense<0.000000e+00> : vector<8x64xf32>
    %44 = tpu.matmul %38, %43, %cst_27 {dimension_numbers = #tpu.dot_dimension_numbers<[1], [0], [0], [1], [0, 0, 1, 1], [], []>} : vector<8x64xf32>, vector<64x64xf32>, vector<8x64xf32> -> vector<8x64xf32>
    %c0_28 = arith.constant 0 : index
    %c0_29 = arith.constant 0 : index
    %c0_30 = arith.constant 0 : index
    %45 = vector.load %arg2[%c0_28, %c0_29, %c0_30] : memref<8x64x64xf32, #tpu.memory_space<vmem>>, vector<1x64x64xf32>
    %46 = vector.shape_cast %45 : vector<1x64x64xf32> to vector<64x64xf32>
    %cst_31 = arith.constant dense<0.000000e+00> : vector<8x64xf32>
    %47 = tpu.matmul %14, %46, %cst_31 {dimension_numbers = #tpu.dot_dimension_numbers<[1], [0], [0], [1], [0, 0, 1, 1], [], []>} : vector<8x64xf32>, vector<64x64xf32>, vector<8x64xf32> -> vector<8x64xf32>
    %c3 = arith.constant 3 : index
    %c0_32 = arith.constant 0 : index
    %48 = vector.load %arg3[%c3, %c0_32] : memref<9x64xf32, #tpu.memory_space<vmem>>, vector<1x64xf32>
    %49 = vector.broadcast %48 : vector<1x64xf32> to vector<8x64xf32>
    %50 = arith.addf %47, %49 : vector<8x64xf32>
    %cst_33 = arith.constant 0.000000e+00 : f32
    %51 = vector.broadcast %cst_33 : f32 to vector<8x64xf32>
    %52 = arith.cmpf ogt, %50, %51 : vector<8x64xf32>
    %cst_34 = arith.constant 0.00999999977 : f32
    %53 = vector.broadcast %cst_34 : f32 to vector<8x64xf32>
    %54 = arith.mulf %53, %50 : vector<8x64xf32>
    %55 = arith.select %52, %50, %54 : vector<8x64xi1>, vector<8x64xf32>
    %c3_35 = arith.constant 3 : index
    %c0_36 = arith.constant 0 : index
    %c0_37 = arith.constant 0 : index
    %56 = vector.load %arg2[%c3_35, %c0_36, %c0_37] : memref<8x64x64xf32, #tpu.memory_space<vmem>>, vector<1x64x64xf32>
    %57 = vector.shape_cast %56 : vector<1x64x64xf32> to vector<64x64xf32>
    %cst_38 = arith.constant dense<0.000000e+00> : vector<8x64xf32>
    %58 = tpu.matmul %55, %57, %cst_38 {dimension_numbers = #tpu.dot_dimension_numbers<[1], [0], [0], [1], [0, 0, 1, 1], [], []>} : vector<8x64xf32>, vector<64x64xf32>, vector<8x64xf32> -> vector<8x64xf32>
    %59 = arith.addf %58, %41 : vector<8x64xf32>
    %c4 = arith.constant 4 : index
    %c0_39 = arith.constant 0 : index
    %60 = vector.load %arg3[%c4, %c0_39] : memref<9x64xf32, #tpu.memory_space<vmem>>, vector<1x64xf32>
    %61 = vector.broadcast %60 : vector<1x64xf32> to vector<8x64xf32>
    %62 = arith.addf %59, %61 : vector<8x64xf32>
    %cst_40 = arith.constant 0.000000e+00 : f32
    %63 = vector.broadcast %cst_40 : f32 to vector<8x64xf32>
    %64 = arith.cmpf ogt, %62, %63 : vector<8x64xf32>
    %cst_41 = arith.constant 0.00999999977 : f32
    %65 = vector.broadcast %cst_41 : f32 to vector<8x64xf32>
    %66 = arith.mulf %65, %62 : vector<8x64xf32>
    %67 = arith.select %64, %62, %66 : vector<8x64xi1>, vector<8x64xf32>
    %c4_42 = arith.constant 4 : index
    %c0_43 = arith.constant 0 : index
    %c0_44 = arith.constant 0 : index
    %68 = vector.load %arg2[%c4_42, %c0_43, %c0_44] : memref<8x64x64xf32, #tpu.memory_space<vmem>>, vector<1x64x64xf32>
    %69 = vector.shape_cast %68 : vector<1x64x64xf32> to vector<64x64xf32>
    %cst_45 = arith.constant dense<0.000000e+00> : vector<8x64xf32>
    %70 = tpu.matmul %67, %69, %cst_45 {dimension_numbers = #tpu.dot_dimension_numbers<[1], [0], [0], [1], [0, 0, 1, 1], [], []>} : vector<8x64xf32>, vector<64x64xf32>, vector<8x64xf32> -> vector<8x64xf32>
    %71 = arith.addf %70, %44 : vector<8x64xf32>
    %c5 = arith.constant 5 : index
    %c0_46 = arith.constant 0 : index
    %72 = vector.load %arg3[%c5, %c0_46] : memref<9x64xf32, #tpu.memory_space<vmem>>, vector<1x64xf32>
    %73 = vector.broadcast %72 : vector<1x64xf32> to vector<8x64xf32>
    %74 = arith.addf %71, %73 : vector<8x64xf32>
    %cst_47 = arith.constant 0.000000e+00 : f32
    %75 = vector.broadcast %cst_47 : f32 to vector<8x64xf32>
    %76 = arith.cmpf ogt, %74, %75 : vector<8x64xf32>
    %cst_48 = arith.constant 0.00999999977 : f32
    %77 = vector.broadcast %cst_48 : f32 to vector<8x64xf32>
    %78 = arith.mulf %77, %74 : vector<8x64xf32>
    %79 = arith.select %76, %74, %78 : vector<8x64xi1>, vector<8x64xf32>
    %c5_49 = arith.constant 5 : index
    %c0_50 = arith.constant 0 : index
    %c0_51 = arith.constant 0 : index
    %80 = vector.load %arg2[%c5_49, %c0_50, %c0_51] : memref<8x64x64xf32, #tpu.memory_space<vmem>>, vector<1x64x64xf32>
    %81 = vector.shape_cast %80 : vector<1x64x64xf32> to vector<64x64xf32>
    %cst_52 = arith.constant dense<0.000000e+00> : vector<8x64xf32>
    %82 = tpu.matmul %79, %81, %cst_52 {dimension_numbers = #tpu.dot_dimension_numbers<[1], [0], [0], [1], [0, 0, 1, 1], [], []>} : vector<8x64xf32>, vector<64x64xf32>, vector<8x64xf32> -> vector<8x64xf32>
    %c6 = arith.constant 6 : index
    %c0_53 = arith.constant 0 : index
    %83 = vector.load %arg3[%c6, %c0_53] : memref<9x64xf32, #tpu.memory_space<vmem>>, vector<1x64xf32>
    %84 = vector.broadcast %83 : vector<1x64xf32> to vector<8x64xf32>
    %85 = arith.addf %82, %84 : vector<8x64xf32>
    %cst_54 = arith.constant 0.000000e+00 : f32
    %86 = vector.broadcast %cst_54 : f32 to vector<8x64xf32>
    %87 = arith.cmpf ogt, %85, %86 : vector<8x64xf32>
    %cst_55 = arith.constant 0.00999999977 : f32
    %88 = vector.broadcast %cst_55 : f32 to vector<8x64xf32>
    %89 = arith.mulf %88, %85 : vector<8x64xf32>
    %90 = arith.select %87, %85, %89 : vector<8x64xi1>, vector<8x64xf32>
    %c6_56 = arith.constant 6 : index
    %c0_57 = arith.constant 0 : index
    %c0_58 = arith.constant 0 : index
    %91 = vector.load %arg2[%c6_56, %c0_57, %c0_58] : memref<8x64x64xf32, #tpu.memory_space<vmem>>, vector<1x64x64xf32>
    %92 = vector.shape_cast %91 : vector<1x64x64xf32> to vector<64x64xf32>
    %cst_59 = arith.constant dense<0.000000e+00> : vector<8x64xf32>
    %93 = tpu.matmul %90, %92, %cst_59 {dimension_numbers = #tpu.dot_dimension_numbers<[1], [0], [0], [1], [0, 0, 1, 1], [], []>} : vector<8x64xf32>, vector<64x64xf32>, vector<8x64xf32> -> vector<8x64xf32>
    %c7 = arith.constant 7 : index
    %c0_60 = arith.constant 0 : index
    %94 = vector.load %arg3[%c7, %c0_60] : memref<9x64xf32, #tpu.memory_space<vmem>>, vector<1x64xf32>
    %95 = vector.broadcast %94 : vector<1x64xf32> to vector<8x64xf32>
    %96 = arith.addf %93, %95 : vector<8x64xf32>
    %cst_61 = arith.constant 0.000000e+00 : f32
    %97 = vector.broadcast %cst_61 : f32 to vector<8x64xf32>
    %98 = arith.cmpf ogt, %96, %97 : vector<8x64xf32>
    %cst_62 = arith.constant 0.00999999977 : f32
    %99 = vector.broadcast %cst_62 : f32 to vector<8x64xf32>
    %100 = arith.mulf %99, %96 : vector<8x64xf32>
    %101 = arith.select %98, %96, %100 : vector<8x64xi1>, vector<8x64xf32>
    %c7_63 = arith.constant 7 : index
    %c0_64 = arith.constant 0 : index
    %c0_65 = arith.constant 0 : index
    %102 = vector.load %arg2[%c7_63, %c0_64, %c0_65] : memref<8x64x64xf32, #tpu.memory_space<vmem>>, vector<1x64x64xf32>
    %103 = vector.shape_cast %102 : vector<1x64x64xf32> to vector<64x64xf32>
    %cst_66 = arith.constant dense<0.000000e+00> : vector<8x64xf32>
    %104 = tpu.matmul %101, %103, %cst_66 {dimension_numbers = #tpu.dot_dimension_numbers<[1], [0], [0], [1], [0, 0, 1, 1], [], []>} : vector<8x64xf32>, vector<64x64xf32>, vector<8x64xf32> -> vector<8x64xf32>
    %c8 = arith.constant 8 : index
    %c0_67 = arith.constant 0 : index
    %105 = vector.load %arg3[%c8, %c0_67] : memref<9x64xf32, #tpu.memory_space<vmem>>, vector<1x64xf32>
    %106 = vector.broadcast %105 : vector<1x64xf32> to vector<8x64xf32>
    %107 = arith.addf %104, %106 : vector<8x64xf32>
    %cst_68 = arith.constant 0.000000e+00 : f32
    %108 = vector.broadcast %cst_68 : f32 to vector<8x64xf32>
    %109 = arith.cmpf ogt, %107, %108 : vector<8x64xf32>
    %cst_69 = arith.constant 0.00999999977 : f32
    %110 = vector.broadcast %cst_69 : f32 to vector<8x64xf32>
    %111 = arith.mulf %110, %107 : vector<8x64xf32>
    %112 = arith.select %109, %107, %111 : vector<8x64xi1>, vector<8x64xf32>
    %c0_70 = arith.constant 0 : index
    %c0_71 = arith.constant 0 : index
    %113 = vector.load %arg4[%c0_70, %c0_71] : memref<64x256xf32, #tpu.memory_space<vmem>>, vector<64x256xf32>
    %cst_72 = arith.constant dense<0.000000e+00> : vector<8x256xf32>
    %114 = tpu.matmul %112, %113, %cst_72 {dimension_numbers = #tpu.dot_dimension_numbers<[1], [0], [0], [1], [0, 0, 1, 1], [], []>} : vector<8x64xf32>, vector<64x256xf32>, vector<8x256xf32> -> vector<8x256xf32>
    %c0_73 = arith.constant 0 : index
    %c0_74 = arith.constant 0 : index
    %115 = vector.load %arg5[%c0_73, %c0_74] : memref<1x256xf32, #tpu.memory_space<vmem>>, vector<1x256xf32>
    %116 = vector.broadcast %115 : vector<1x256xf32> to vector<8x256xf32>
    %117 = arith.addf %114, %116 : vector<8x256xf32>
    %c0_75 = arith.constant 0 : index
    %c0_76 = arith.constant 0 : index
    %118 = vector.load %arg6[%c0_75, %c0_76] : memref<8x256xf32, #tpu.memory_space<vmem>>, vector<8x256xf32>
    tpu.vector_store %arg6[%c0_75, %c0_76], %117 {strides = array<i32>} : memref<8x256xf32, #tpu.memory_space<vmem>>, vector<8x256xf32>,
    return
  }
}

</mosaic_0001>

<bundles_post_ra>
// kernel: tpu_custom_call.1
= control target key start
LH: loop header
LB: loop body
LE: loop exit
PB: predicated region body
PF: predicated region fallthrough
CT: control target
= control target key end

     0   :  { %11 = vsyncpa [#allocation3], 0  ;;  %s1567_s0 = inlined_call_operand.vmem [shape: f32[8,4], index: 0, kind: input, shape index: {}]   ;;  %s1568_s1 = inlined_call_operand.vmem [shape: f32[3,64], index: 1, kind: input, shape index: {}]   ;;  %s1569_s2 = inlined_call_operand.hbm [shape: f32[8,64,64], index: 2, kind: input, shape index: {}]   ;;  %s1570_s3 = inlined_call_operand.vmem [shape: f32[9,64], index: 3, kind: input, shape index: {}]   ;;  %s1571_s4 = inlined_call_operand.hbm [shape: f32[64,256], index: 4, kind: input, shape index: {}]   ;;  %s1572_s5 = inlined_call_operand.vmem [shape: f32[1,256], index: 5, kind: input, shape index: {}]   ;;  %s1573_s6 = inlined_call_operand.hbm [shape: f32[8,256], index: 6, kind: output, shape index: {}]  }
   0x1   :  { %12 = vsyncpa [#allocation6], 0 }
   0x2   :  { %13 = vsyncpa [#allocation4], 0  ;;  %s1383_s21 = smov [#allocation2]   ;;  %s1311_s25 = scalar_lea.hbm %s1569_s2, 8192 }
   0x3   :  { %s23_s22 = sshll.u32 %s1383_s21, 4  ;;  %p1312_p0 = scmp.ne.s32.totalorder %s1569_s2, %s1311_s25  ;;  %s24_s22 = int_to_ptr.vmem [resolvable:$true] %s23_s22 }
   0x4   :  { %p1315_p1 = scmp.lt.u32.totalorder %s1311_s25, %s1569_s2 }
   0x6   :  { %p1317_p2 = pnand %p1315_p1, %p1312_p0 }
   0x8   :  { %1320 = shalt.err (!%p1317_p2)
}
   0x9   :  { %s1321_s30 = scalar_lea.vmem %s24_s22, 8192  ;;  %p1326_p4 = scmp.lt.s32.totalorder %s24_s22, %s24_s22 }
   0xa   :  { %p1322_p3 = scmp.ne.s32.totalorder %s24_s22, %s1321_s30  ;;  %p1327_p5 = scmp.lt.s32.totalorder %s1321_s30, %s1321_s30 }
   0xc   :  { %p1328_p6 = por %p1327_p5, %p1326_p4 }
   0xe   :  { %p1329_p7 = pnand %p1328_p6, %p1322_p3 }
  0x10   :  { %1332 = shalt.err (!%p1329_p7)
}
  0x11   :  { %s1384_s7 = smov 128   ;;  %s1385_s8 = smov 8  }
  0x12   :  { %29 = dma.hbm_to_vmem [thread:$0]  %s1569_s2, 8192, %s24_s22, [#allocation3], %s1384_s7, %s1384_s7, %s1385_s8  }
  0x13   :  { %s1386_s11 = smov [#allocation5]   ;;  %s1333_s15 = scalar_lea.hbm %s1571_s4, 2048 }
  0x14   :  { %s37_s12 = sshll.u32 %s1386_s11, 4  ;;  %p1334_p8 = scmp.ne.s32.totalorder %s1571_s4, %s1333_s15  ;;  %s38_s12 = int_to_ptr.vmem [resolvable:$true] %s37_s12 }
  0x15   :  { %p1337_p9 = scmp.lt.u32.totalorder %s1333_s15, %s1571_s4 }
  0x17   :  { %p1339_p10 = pnand %p1337_p9, %p1334_p8 }
  0x19   :  { %1342 = shalt.err (!%p1339_p10)
}
  0x1a   :  { %s1343_s20 = scalar_lea.vmem %s38_s12, 2048  ;;  %p1348_p12 = scmp.lt.s32.totalorder %s38_s12, %s38_s12 }
  0x1b   :  { %p1344_p11 = scmp.ne.s32.totalorder %s38_s12, %s1343_s20  ;;  %p1349_p13 = scmp.lt.s32.totalorder %s1343_s20, %s1343_s20 }
  0x1d   :  { %p1350_p0 = por %p1349_p13, %p1348_p12 }
  0x1f   :  { %p1351_p1 = pnand %p1350_p0, %p1344_p11 }
  0x21   :  { %1354 = shalt.err (!%p1351_p1)
}
  0x22   :  { %s1387_s2 = smov 256   ;;  %s1388_s21 = smov 16  }
  0x23   :  { %43 = dma.hbm_to_vmem [thread:$0]  %s1571_s4, 2048, %s38_s12, [#allocation6], %s1387_s2, %s1387_s2, %s1388_s21  }
  0x24   :  { %1377 = dma.done.wait [#allocation3], 8192  }
  0x25   :  { %1378 = vsyncadd [#allocation3], 4294959104 }
  0x26   :  { %1379 = dma.done.wait [#allocation6], 2048  }
  0x27   :  { %1380 = vsyncadd [#allocation6], 4294965248  ;;  %v1389_v0 = vmov 1   ;;  %v1390_v1 = vmov 0.0|0.0   ;;  %v52_v2 = vld [vmem:[%s1567_s0] sm:$0xff]  ;;  %v112_v3 = vld [vmem:[#allocation2 + $0x40] sm:$0xff] }
  0x28   :  { %1307 = vset.pattern.permute.xlu0 %v1389_v0  ;;  %1182 = vmatprep.subr.bf16.mxu0 %v1390_v1  ;;  %v113_v4 = vld [vmem:[#allocation2 + $0x48] sm:$0xff]  ;;  %v114_v6 = vld [vmem:[#allocation2 + $0x50] sm:$0xff]  ;;  %v115_v7 = vld [vmem:[#allocation2 + $0x58] sm:$0xff]  ;;  %v1391_v11 = vmov 0   ;;  %vm1392_vm0 = vmmov 0   ;;  %v1393_v12 = vmov 0.0  }
  0x29   :  { %1194 = vmatprep.subr.bf16.mxu1 %v1390_v1  ;;  %75 = vperm.xlu0 %1307, %v52_v2   ;;  %v1183_v5 = vpack.c.bf16 %v113_v4, %v112_v3  ;;  %v1186_v8 = vpack.c.bf16 %v115_v7, %v114_v6  ;;  %v116_v9 = vld [vmem:[#allocation2 + $0x60] sm:$0xff]  ;;  %v117_v10 = vld [vmem:[#allocation2 + $0x68] sm:$0xff]  ;;  %v118_v14 = vld [vmem:[#allocation2 + $0x70] sm:$0xff]  ;;  %v1394_v20 = vmov 2   ;;  %vm120_vm2 = vcmask 523264   ;;  %s1395_s24 = smov [#allocation7]  }
  0x2a   :  { %1046 = vmatprep.mubr.msk.f32.mxu0 %vm1392_vm0, %v1393_v12  ;;  %v1189_v13 = vpack.c.bf16 %v117_v10, %v116_v9  ;;  %1065 = vmatprep.mubr.msk.f32.mxu1 %vm1392_vm0, %v1393_v12  ;;  %v119_v15 = vld [vmem:[#allocation2 + $0x78] sm:$0xff]  ;;  %v195_v17 = vld [vmem:[#allocation2 + $0x80] sm:$0xff]  ;;  %v196_v18 = vld [vmem:[#allocation2 + $0x88] sm:$0xff] }
  0x2b   :  { %1184 = vmatpush3.bf16.msra.mxu0 %v1183_v5  ;;  %v1192_v16 = vpack.c.bf16 %v119_v15, %v118_v14  ;;  %v197_v19 = vld [vmem:[#allocation2 + $0x90] sm:$0xff]  ;;  %1309 = vset.pattern.permute.xlu1 %v1394_v20  ;;  %v1195_v21 = vpack.c.bf16 %v196_v18, %v195_v17  ;;  %v198_v22 = vld [vmem:[#allocation2 + $0x98] sm:$0xff]  ;;  %v199_v24 = vld [vmem:[#allocation2 + $0xa0] sm:$0xff] }
  0x2c   :  { %1185 = vmatprep.subr.bf16.mxu0 %v1390_v1  ;;  %94 = vperm.xlu1 %1309, %v52_v2   ;;  %v1198_v23 = vpack.c.bf16 %v198_v22, %v197_v19  ;;  %v200_v25 = vld [vmem:[#allocation2 + $0xa8] sm:$0xff]  ;;  %v939_v27 = vld [vmem:[%s1568_s1 + $0x1] ss:$0 sm:$0xff]  ;;  %v276_v31 = vld [vmem:[#allocation2] sm:$0xff] }
  0x2d   :  { %1308 = vset.pattern.permute.xlu0 %v1391_v11  ;;  %1196 = vmatpush3.bf16.msra.mxu1 %v1195_v21  ;;  %v1201_v26 = vpack.c.bf16 %v200_v25, %v199_v24  ;;  %v940_v28 = vld [vmem:[%s1570_s3 + $0x1] ss:$0 sm:$0xff]  ;;  %v277_v32 = vld [vmem:[#allocation2 + $0x8] sm:$0xff]  ;;  %v279_v37 = vld [vmem:[#allocation2 + $0x18] sm:$0xff] }
  0x2e   :  { %56 = vperm.xlu0 %1308, %v52_v2   ;;  %1197 = vmatprep.subr.bf16.mxu1 %v1390_v1  ;;  %v1207_v35 = vpack.c.bf16 %v277_v32, %v276_v31  ;;  %v278_v36 = vld [vmem:[#allocation2 + $0x10] sm:$0xff]  ;;  %v280_v42 = vld [vmem:[#allocation2 + $0x20] sm:$0xff]  ;;  %v281_v43 = vld [vmem:[#allocation2 + $0x28] sm:$0xff] }
  0x2f   :  { %1187 = vmatpush3.bf16.msra.mxu0 %v1186_v8  ;;  %v937_v39 = vld [vmem:[%s1568_s1] ss:$0 sm:$0xff]  ;;  %v1210_v41 = vpack.c.bf16 %v279_v37, %v278_v36  ;;  %v1213_v46 = vpack.c.bf16 %v281_v43, %v280_v42  ;;  %v283_v48 = vld [vmem:[#allocation2 + $0x38] sm:$0xff]  ;;  %v941_v53 = vld [vmem:[%s1568_s1 + $0x2] ss:$0 sm:$0xff] }
  0x30   :  { %1188 = vmatprep.subr.bf16.mxu0 %v1390_v1  ;;  %v938_v45 = vld [vmem:[%s1570_s3] ss:$0 sm:$0xff]  ;;  %v942_v56 = vld [vmem:[%s1570_s3 + $0x2] ss:$0 sm:$0xff]  ;;  %v202_v60 = vld [vmem:[#allocation2 + $0xb8] sm:$0xff] }
  0x31   :  { %1199 = vmatpush3.bf16.msra.mxu1 %v1198_v23  ;;  %v282_v47 = vld [vmem:[#allocation2 + $0x30] sm:$0xff]  ;;  %v366_v62 = vld [vmem:[#allocation2 + $0xc0] sm:$0xff]  ;;  %v367_v63 = vld [vmem:[#allocation2 + $0xc8] sm:$0xff] }
  0x32   :  { %1310 = vset.pattern.permute.xlu0 %v1394_v20  ;;  %1200 = vmatprep.subr.bf16.mxu1 %v1390_v1  ;;  %v1216_v50 = vpack.c.bf16 %v283_v48, %v282_v47  ;;  %v201_v59 = vld [vmem:[#allocation2 + $0xb0] sm:$0xff]  ;;  %v1219_v2 = vpack.c.bf16 %v367_v63, %v366_v62  ;;  %v369_v4 = vld [vmem:[#allocation2 + $0xd8] sm:$0xff]  ;;  %v370_v6 = vld [vmem:[#allocation2 + $0xe0] sm:$0xff] }
  0x33   :  { %1190 = vmatpush3.bf16.msra.mxu0 %v1189_v13  ;;  %v1204_v61 = vpack.c.bf16 %v202_v60, %v201_v59  ;;  %v368_v3 = vld [vmem:[#allocation2 + $0xd0] sm:$0xff]  ;;  %v371_v7 = vld [vmem:[#allocation2 + $0xe8] sm:$0xff]  ;;  %v373_v10 = vld [vmem:[#allocation2 + $0xf8] sm:$0xff] }
  0x34   :  { %1191 = vmatprep.subr.bf16.mxu0 %v1390_v1  ;;  %v1222_v5 = vpack.c.bf16 %v369_v4, %v368_v3  ;;  %v1225_v8 = vpack.c.bf16 %v371_v7, %v370_v6  ;;  %v372_v9 = vld [vmem:[#allocation2 + $0xf0] sm:$0xff]  ;;  %v457_v13 = vld [vmem:[#allocation2 + $0x100] sm:$0xff]  ;;  %v458_v14 = vld [vmem:[#allocation2 + $0x108] sm:$0xff] }
  0x35   :  { %1202 = vmatpush3.bf16.msra.mxu1 %v1201_v26  ;;  %v1228_v11 = vpack.c.bf16 %v373_v10, %v372_v9  ;;  %v459_v15 = vld [vmem:[#allocation2 + $0x110] sm:$0xff]  ;;  %v460_v17 = vld [vmem:[#allocation2 + $0x118] sm:$0xff]  ;;  %v549_v36 = vld [vmem:[#allocation2 + $0x148] sm:$0xff] }
  0x36   :  { %1203 = vmatprep.subr.bf16.mxu1 %v1390_v1  ;;  %v1234_v18 = vpack.c.bf16 %v460_v17, %v459_v15  ;;  %v945_v21 = vld [vmem:[%s1570_s3 + $0x3] ss:$0 sm:$0xff]  ;;  %v948_v42 = vld [vmem:[%s1570_s3 + $0x4] ss:$0 sm:$0xff]  ;;  %v552_v48 = vld [vmem:[#allocation2 + $0x160] sm:$0xff] }
  0x37   :  { %1193 = vmatpush3.bf16.msra.mxu0 %v1192_v16  ;;  %v1231_v16 = vpack.c.bf16 %v458_v14, %v457_v13  ;;  %v463_v32 = vld [vmem:[#allocation2 + $0x130] sm:$0xff]  ;;  %v642_v60 = vld [vmem:[#allocation2 + $0x1a0] sm:$0xff]  ;;  %v731_v15 = vld [vmem:[#allocation2 + $0x1d8] sm:$0xff] }
  0x38   :  { %1206 = vmatprep.subr.bf16.mxu0 %v1390_v1  ;;  %v550_v37 = vld [vmem:[#allocation2 + $0x150] sm:$0xff]  ;;  %v728_v10 = vld [vmem:[#allocation2 + $0x1c0] sm:$0xff] }
  0x39   :  { %1205 = vmatpush3.bf16.msra.mxu1 %v1204_v61  ;;  %v643_v61 = vld [vmem:[#allocation2 + $0x1a8] sm:$0xff]  ;;  %v644_v7 = vld [vmem:[#allocation2 + $0x1b0] sm:$0xff]  ;;  %v732_v17 = vld [vmem:[#allocation2 + $0x1e0] sm:$0xff] }
  0x3a   :  { %1218 = vmatprep.subr.bf16.mxu1 %v1390_v1  ;;  %v1261_v62 = vpack.c.bf16 %v643_v61, %v642_v60  ;;  %v730_v13 = vld [vmem:[#allocation2 + $0x1d0] sm:$0xff] }
  0xa8   :  { %v76_v29 = vpop.permute.xlu0 %75 }
  0xa9   :  { %v82_v30 = vmul.f32 %v939_v27, %v76_v29  ;;  %v461_v29 = vld [vmem:[#allocation2 + $0x120] sm:$0xff] }
  0xab   :  { %v88_v33 = vadd.f32 %v940_v28, %v82_v30  ;;  %v95_v54 = vpop.permute.xlu1 %94  ;;  %v462_v30 = vld [vmem:[#allocation2 + $0x128] sm:$0xff] }
  0xac   :  { %v101_v55 = vmul.f32 %v941_v53, %v95_v54  ;;  %v1237_v31 = vpack.c.bf16 %v462_v30, %v461_v29  ;;  %v638_v54 = vld [vmem:[#allocation2 + $0x180] sm:$0xff]  ;;  %v818_v29 = vld [vmem:[#allocation5 + $0x8] sm:$0xff] }
  0xad   :  { %v90_v34 = vmul.f32 0.01, %v88_v33  ;;  %vm89_vm1 = vcmp.gt.f32.partialorder %v88_v33, 0.0  ;;  %v57_v40 = vpop.permute.xlu0 %56  ;;  %v817_v30 = vld [vmem:[#allocation5] sm:$0xff] }
  0xae   :  { %v63_v44 = vmul.f32 %v937_v39, %v57_v40  ;;  %v107_v57 = vadd.f32 %v942_v56, %v101_v55  ;;  %v551_v39 = vld [vmem:[#allocation2 + $0x158] sm:$0xff]  ;;  %v639_v55 = vld [vmem:[#allocation2 + $0x188] sm:$0xff]  ;;  %v640_v56 = vld [vmem:[#allocation2 + $0x190] sm:$0xff] }
  0xaf   :  { %v91_v38 = vsel %vm89_vm1, %v88_v33, %v90_v34  ;;  %v464_v33 = vld [vmem:[#allocation2 + $0x138] sm:$0xff]  ;;  %v1246_v40 = vpack.c.bf16 %v551_v39, %v550_v37  ;;  %v821_v37 = vld [vmem:[#allocation5 + $0x20] sm:$0xff]  ;;  %v826_v39 = vld [vmem:[#allocation5 + $0x48] sm:$0xff] }
  0xb0   :  { %1047 = vmatmul.mubr.msk.f32.vlgmr.msra.gmra.mrb[0].mxu0 %vm120_vm2, %v91_v38  ;;  %v69_v49 = vadd.f32 %v938_v45, %v63_v44  ;;  %v109_v58 = vmul.f32 0.01, %v107_v57  ;;  %vm108_vm4 = vcmp.gt.f32.partialorder %v107_v57, 0.0  ;;  %v1240_v34 = vpack.c.bf16 %v464_v33, %v463_v32  ;;  %v819_v32 = vld [vmem:[#allocation5 + $0x10] sm:$0xff]  ;;  %v822_v33 = vld [vmem:[#allocation5 + $0x28] sm:$0xff] }
  0xb1   :  { %1208 = vmatpush3.bf16.msra.mxu0 %v1207_v35  ;;  %1084 = vmatprep.mubr.msk.f32.mxu0 %vm1392_vm0, %v1393_v12  ;;  %v548_v35 = vld [vmem:[#allocation2 + $0x140] sm:$0xff] }
  0xb2   :  { %1209 = vmatprep.subr.bf16.mxu0 %v1390_v1  ;;  %v71_v51 = vmul.f32 0.01, %v69_v49  ;;  %vm70_vm3 = vcmp.gt.f32.partialorder %v69_v49, 0.0  ;;  %v110_v0 = vsel %vm108_vm4, %v107_v57, %v109_v58  ;;  %v1243_v38 = vpack.c.bf16 %v549_v36, %v548_v35  ;;  %v641_v58 = vld [vmem:[#allocation2 + $0x198] sm:$0xff] }
  0xb3   :  { %1066 = vmatmul.mubr.msk.f32.vlgmr.msra.gmra.mrb[0].mxu1 %vm120_vm2, %v110_v0  ;;  %v1255_v57 = vpack.c.bf16 %v639_v55, %v638_v54  ;;  %v1258_v59 = vpack.c.bf16 %v641_v58, %v640_v56  ;;  %v950_v0 = vld [vmem:[%s1570_s3 + $0x5] ss:$0 sm:$0xff]  ;;  %v1280_v35 = vpack.c.bf16 %v819_v32, %v817_v30  ;;  %v829_v54 = vld [vmem:[#allocation5 + $0x60] sm:$0xff] }
  0xb4   :  { %v72_v52 = vsel %vm70_vm3, %v69_v49, %v71_v51  ;;  %1220 = vmatpush3.bf16.msra.mxu1 %v1219_v2  ;;  %1103 = vmatprep.mubr.msk.f32.mxu1 %vm1392_vm0, %v1393_v12  ;;  %v553_v49 = vld [vmem:[#allocation2 + $0x168] sm:$0xff]  ;;  %v554_v51 = vld [vmem:[#allocation2 + $0x170] sm:$0xff] }
  0xb5   :  { %1211 = vmatpush3.bf16.msra.mxu0 %v1210_v41  ;;  %1221 = vmatprep.subr.bf16.mxu1 %v1390_v1  ;;  %v831_v55 = vld [vmem:[#allocation5 + $0x70] sm:$0xff] }
  0xb6   :  { %1212 = vmatprep.subr.bf16.mxu0 %v1390_v1  ;;  %v1292_v56 = vpack.c.bf16 %v831_v55, %v829_v54 }
  0xb8   :  { %1223 = vmatpush3.bf16.msra.mxu1 %v1222_v5 }
  0xb9   :  { %1214 = vmatpush3.bf16.msra.mxu0 %v1213_v46  ;;  %1224 = vmatprep.subr.bf16.mxu1 %v1390_v1 }
  0xba   :  { %1215 = vmatprep.subr.bf16.mxu0 %v1390_v1 }
  0xbc   :  { %1226 = vmatpush3.bf16.msra.mxu1 %v1225_v8  ;;  %v645_v8 = vld [vmem:[#allocation2 + $0x1b8] sm:$0xff] }
  0xbd   :  { %1217 = vmatpush3.bf16.msra.mxu0 %v1216_v50  ;;  %1227 = vmatprep.subr.bf16.mxu1 %v1390_v1  ;;  %v1249_v50 = vpack.c.bf16 %v553_v49, %v552_v48  ;;  %v1264_v9 = vpack.c.bf16 %v645_v8, %v644_v7 }
  0xbe   :  { %1230 = vmatprep.subr.bf16.mxu0 %v1390_v1 }
  0xc0   :  { %1085 = vmatmul.mubr.msk.f32.vlgmr.msra.gmra.mrb[2].mxu0 %vm120_vm2, %v72_v52  ;;  %1229 = vmatpush3.bf16.msra.mxu1 %v1228_v11  ;;  %v555_v52 = vld [vmem:[#allocation2 + $0x178] sm:$0xff]  ;;  %v729_v11 = vld [vmem:[#allocation2 + $0x1c8] sm:$0xff] }
  0xc1   :  { %1122 = vmatprep.mubr.msk.f32.mxu0 %vm1392_vm0, %v1393_v12  ;;  %1242 = vmatprep.subr.bf16.mxu1 %v1390_v1  ;;  %v1252_v53 = vpack.c.bf16 %v555_v52, %v554_v51  ;;  %v1267_v14 = vpack.c.bf16 %v729_v11, %v728_v10  ;;  %v830_v51 = vld [vmem:[#allocation5 + $0x68] sm:$0xff]  ;;  %v832_v52 = vld [vmem:[#allocation5 + $0x78] sm:$0xff] }
  0xc2   :  { %1232 = vmatpush3.bf16.msra.mxu0 %v1231_v16  ;;  %v1270_v16 = vpack.c.bf16 %v731_v15, %v730_v13 }
  0xc3   :  { %1233 = vmatprep.subr.bf16.mxu0 %v1390_v1 }
  0xc6   :  { %1235 = vmatpush3.bf16.msra.mxu0 %v1234_v18  ;;  %v733_v18 = vld [vmem:[#allocation2 + $0x1e8] sm:$0xff] }
  0xc7   :  { %1236 = vmatprep.subr.bf16.mxu0 %v1390_v1 }
  0xca   :  { %1238 = vmatpush3.bf16.msra.mxu0 %v1237_v31 }
  0xcb   :  { %1239 = vmatprep.subr.bf16.mxu0 %v1390_v1 }
  0xce   :  { %1241 = vmatpush3.bf16.msra.mxu0 %v1240_v34  ;;  %v824_v34 = vld [vmem:[#allocation5 + $0x38] sm:$0xff] }
  0xcf   :  { %1254 = vmatprep.subr.bf16.mxu0 %v1390_v1  ;;  %v1282_v36 = vpack.c.bf16 %v824_v34, %v822_v33 }
 0x183   :  { %v190_v19 = vpop.f32.mrb[0].mxu0 }
 0x184   :  { %v1048_v20 = vpop.f32.mrb[1].mxu0 }
 0x185   :  { %v951_v20 = vld [vmem:[%s1570_s3 + $0x6] ss:$0 sm:$0xff] }
 0x186   :  { %v272_v27 = vpop.f32.mrb[0].mxu1 }
 0x187   :  { %v1067_v28 = vpop.f32.mrb[1].mxu1 }
 0x193   :  { %v358_v22 = vpop.f32.mrb[2].mxu0 }
 0x194   :  { %v359_v23 = vadd.f32 %v945_v21, %v358_v22  ;;  %v1086_v24 = vpop.f32.mrb[3].mxu0 }
 0x196   :  { %vm362_vm5 = vcmp.gt.f32.partialorder %v359_v23, 0.0  ;;  %v363_v25 = vmul.f32 0.01, %v359_v23 }
 0x198   :  { %v364_v26 = vsel %vm362_vm5, %v359_v23, %v363_v25 }
 0x199   :  { %1104 = vmatmul.mubr.msk.f32.vlgmr.msra.gmra.mrb[2].mxu1 %vm120_vm2, %v364_v26  ;;  %v734_v26 = vld [vmem:[#allocation2 + $0x1f0] sm:$0xff] }
 0x19a   :  { %1141 = vmatprep.mubr.msk.f32.mxu1 %vm1392_vm0, %v1393_v12  ;;  %1244 = vmatpush3.bf16.msra.mxu1 %v1243_v38  ;;  %v823_v38 = vld [vmem:[#allocation5 + $0x30] sm:$0xff] }
 0x19b   :  { %1245 = vmatprep.subr.bf16.mxu1 %v1390_v1 }
 0x19e   :  { %1247 = vmatpush3.bf16.msra.mxu1 %v1246_v40  ;;  %v828_v40 = vld [vmem:[#allocation5 + $0x58] sm:$0xff] }
 0x19f   :  { %1248 = vmatprep.subr.bf16.mxu1 %v1390_v1 }
 0x1a2   :  { %1250 = vmatpush3.bf16.msra.mxu1 %v1249_v50 }
 0x1a3   :  { %1251 = vmatprep.subr.bf16.mxu1 %v1390_v1 }
 0x1a6   :  { %1253 = vmatpush3.bf16.msra.mxu1 %v1252_v53  ;;  %v1290_v53 = vpack.c.bf16 %v832_v52, %v830_v51 }
 0x1a7   :  { %1266 = vmatprep.subr.bf16.mxu1 %v1390_v1 }
 0x26c   :  { %v443_v41 = vpop.f32.mrb[2].mxu1 }
 0x26d   :  { %v444_v43 = vadd.f32 %v443_v41, %v190_v19  ;;  %v1105_v44 = vpop.f32.mrb[3].mxu1  ;;  %v1273_v19 = vpack.c.bf16 %v733_v18, %v732_v17  ;;  %v1286_v41 = vpack.c.bf16 %v828_v40, %v826_v39 }
 0x26f   :  { %v452_v45 = vadd.f32 %v948_v42, %v444_v43  ;;  %v825_v42 = vld [vmem:[#allocation5 + $0x40] sm:$0xff]  ;;  %v827_v43 = vld [vmem:[#allocation5 + $0x50] sm:$0xff] }
 0x270   :  { %v1288_v44 = vpack.c.bf16 %v827_v43, %v825_v42 }
 0x271   :  { %vm453_vm6 = vcmp.gt.f32.partialorder %v452_v45, 0.0  ;;  %v454_v46 = vmul.f32 0.01, %v452_v45 }
 0x273   :  { %v455_v47 = vsel %vm453_vm6, %v452_v45, %v454_v46  ;;  %v953_v45 = vld [vmem:[%s1570_s3 + $0x7] ss:$0 sm:$0xff] }
 0x274   :  { %1123 = vmatmul.mubr.msk.f32.vlgmr.msra.gmra.mrb[4].mxu0 %vm120_vm2, %v455_v47 }
 0x275   :  { %1160 = vmatprep.mubr.msk.f32.mxu0 %vm1392_vm0, %v1393_v12  ;;  %1256 = vmatpush3.bf16.msra.mxu0 %v1255_v57  ;;  %v955_v57 = vld [vmem:[%s1570_s3 + $0x8] ss:$0 sm:$0xff]  ;;  %s927_s3 = sshll.u32 %s1395_s24, 4  ;;  %s928_s3 = int_to_ptr.vmem [resolvable:$true] %s927_s3 }
 0x276   :  { %1257 = vmatprep.subr.bf16.mxu0 %v1390_v1  ;;  %s1355_s25 = scalar_lea.vmem %s928_s3, 256  ;;  %p1360_p3 = scmp.lt.s32.totalorder %s928_s3, %s928_s3 }
 0x277   :  { %p1356_p2 = scmp.ne.s32.totalorder %s928_s3, %s1355_s25  ;;  %p1361_p4 = scmp.lt.s32.totalorder %s1355_s25, %s1355_s25 }
 0x279   :  { %1259 = vmatpush3.bf16.msra.mxu0 %v1258_v59  ;;  %p1362_p5 = por %p1361_p4, %p1360_p3 }
 0x27a   :  { %1260 = vmatprep.subr.bf16.mxu0 %v1390_v1 }
 0x27b   :  { %p1363_p6 = pnand %p1362_p5, %p1356_p2 }
 0x27d   :  { %1262 = vmatpush3.bf16.msra.mxu0 %v1261_v62 }
 0x27e   :  { %1263 = vmatprep.subr.bf16.mxu0 %v1390_v1 }
 0x281   :  { %1265 = vmatpush3.bf16.msra.mxu0 %v1264_v9 }
 0x347   :  { %v534_v63 = vpop.f32.mrb[4].mxu0 }
 0x348   :  { %v535_v2 = vadd.f32 %v534_v63, %v272_v27  ;;  %v1124_v3 = vpop.f32.mrb[5].mxu0  ;;  %v735_v27 = vld [vmem:[#allocation2 + $0x1f8] sm:$0xff]  ;;  %v835_v63 = vlaneseq }
 0x349   :  { %v1276_v28 = vpack.c.bf16 %v735_v27, %v734_v26  ;;  %v833_v3 = vld [vmem:[%s1572_s5] sm:$0x3] }
 0x34a   :  { %v543_v4 = vadd.f32 %v950_v0, %v535_v2  ;;  %v836_v0 = vshrl.u32 %v835_v63, 7 }
 0x34c   :  { %vm544_vm7 = vcmp.gt.f32.partialorder %v543_v4, 0.0  ;;  %v545_v5 = vmul.f32 0.01, %v543_v4  ;;  %v837_v2 = vsub.s32 0, %v836_v0 }
 0x34e   :  { %v546_v6 = vsel %vm544_vm7, %v543_v4, %v545_v5  ;;  %v841_v4 = vsub.s32 1, %v836_v0  ;;  %v838_v5 = vrot.slane %v833_v3, %v837_v2 }
 0x34f   :  { %1142 = vmatmul.mubr.msk.f32.vlgmr.msra.gmra.mrb[4].mxu1 %vm120_vm2, %v546_v6 }
 0x350   :  { %1179 = vmatprep.mubr.msk.f32.mxu1 %vm1392_vm0, %v1393_v12  ;;  %1268 = vmatpush3.bf16.msra.mxu1 %v1267_v14  ;;  %v842_v6 = vrot.slane %v833_v3, %v841_v4 }
 0x351   :  { %1269 = vmatprep.subr.bf16.mxu1 %v1390_v1 }
 0x354   :  { %1271 = vmatpush3.bf16.msra.mxu1 %v1270_v16 }
 0x355   :  { %1272 = vmatprep.subr.bf16.mxu1 %v1390_v1 }
 0x358   :  { %1274 = vmatpush3.bf16.msra.mxu1 %v1273_v19 }
 0x359   :  { %1275 = vmatprep.subr.bf16.mxu1 %v1390_v1  ;;  %v820_v1 = vld [vmem:[#allocation5 + $0x18] sm:$0xff] }
 0x35a   :  { %v1278_v31 = vpack.c.bf16 %v820_v1, %v818_v29 }
 0x35c   :  { %1277 = vmatpush3.bf16.msra.mxu1 %v1276_v28  ;;  %1279 = vmatprep.subr.bf16.mxu0 %v1278_v31 }
 0x422   :  { %v630_v21 = vpop.f32.mrb[4].mxu1 }
 0x423   :  { %v631_v22 = vadd.f32 %v951_v20, %v630_v21  ;;  %v1143_v23 = vpop.f32.mrb[5].mxu1 }
 0x425   :  { %vm634_vm8 = vcmp.gt.f32.partialorder %v631_v22, 0.0  ;;  %v635_v24 = vmul.f32 0.01, %v631_v22 }
 0x427   :  { %v636_v25 = vsel %vm634_vm8, %v631_v22, %v635_v24 }
 0x428   :  { %1161 = vmatmul.mubr.msk.f32.vlgmr.msra.gmra.mrb[6].mxu0 %vm120_vm2, %v636_v25 }
 0x429   :  { %912 = vmatprep.mubr.f32.mxu0 %v1393_v12  ;;  %1281 = vmatpush1.bf16.msra.mxu0 %v1280_v35  ;;  %v1284_v12 = vpack.c.bf16 %v823_v38, %v821_v37 }
 0x42a   :  { %1283 = vmatprep.subr.bf16.mxu0 %v1282_v36 }
 0x42d   :  { %1285 = vmatpush1.bf16.msra.mxu0 %v1284_v12 }
 0x42e   :  { %1287 = vmatprep.subr.bf16.mxu0 %v1286_v41 }
 0x431   :  { %1289 = vmatpush1.bf16.msra.mxu0 %v1288_v44 }
 0x432   :  { %1291 = vmatprep.subr.bf16.mxu0 %v1290_v53 }
 0x435   :  { %1293 = vmatpush1.bf16.msra.mxu0 %v1292_v56 }
 0x4fb   :  { %v720_v46 = vpop.f32.mrb[6].mxu0 }
 0x4fc   :  { %v721_v47 = vadd.f32 %v953_v45, %v720_v46  ;;  %v1162_v48 = vpop.f32.mrb[7].mxu0 }
 0x4fe   :  { %vm724_vm9 = vcmp.gt.f32.partialorder %v721_v47, 0.0  ;;  %v725_v49 = vmul.f32 0.01, %v721_v47 }
 0x500   :  { %v726_v50 = vsel %vm724_vm9, %v721_v47, %v725_v49 }
 0x501   :  { %1180 = vmatmul.mubr.msk.f32.vlgmr.msra.gmra.mrb[6].mxu1 %vm120_vm2, %v726_v50 }
 0x5d4   :  { %v810_v58 = vpop.f32.mrb[6].mxu1 }
 0x5d5   :  { %v811_v59 = vadd.f32 %v955_v57, %v810_v58  ;;  %v1181_v60 = vpop.f32.mrb[7].mxu1 }
 0x5d7   :  { %vm814_vm10 = vcmp.gt.f32.partialorder %v811_v59, 0.0  ;;  %v815_v61 = vmul.f32 0.01, %v811_v59 }
 0x5d9   :  { %v816_v62 = vsel %vm814_vm10, %v811_v59, %v815_v61 }
 0x5da   :  { %957 = vmatmul.mubr.msk.f32.vlgmr.msra.gmra.mrb[8].mxu0 %vm120_vm2, %v816_v62 }
 0x6ad   :  { %v914_v7 = vpop.f32.mrb[8].mxu0 }
 0x6ae   :  { %v915_v8 = vadd.f32 %v914_v7, %v838_v5  ;;  %v916_v9 = vpop.f32.mrb[9].mxu0 }
 0x6af   :  { %v917_v10 = vadd.f32 %v916_v9, %v842_v6 }
 0x6b0   :  { %919 = vst [vmem:[#allocation7] sm:$0xff] %v915_v8 }
 0x6b1   :  { %920 = vst [vmem:[#allocation7 + $0x8] sm:$0xff] %v917_v10 }
 0x6b2   :  { %1366 = shalt.err (!%p1363_p6)
}
 0x6b3   :  { %s1367_s4 = scalar_lea.hbm %s1573_s6, 256 }
 0x6b4   :  { %p1368_p7 = scmp.ne.s32.totalorder %s1573_s6, %s1367_s4  ;;  %p1371_p8 = scmp.lt.u32.totalorder %s1367_s4, %s1573_s6 }
 0x6b6   :  { %p1373_p9 = pnand %p1371_p8, %p1368_p7 }
 0x6b8   :  { %1376 = shalt.err (!%p1373_p9)
}
 0x6b9   :  { %930 = dma.vmem_to_hbm [thread:$0]  %s928_s3, 256, %s1573_s6, [#allocation4]  }
 0x6ba   :  { %1381 = dma.done.wait [#allocation4], 256  }
 0x6bb   :  { %1382 = vsyncadd [#allocation4], 4294967040 }
 0x6bc   :  { %934 = vsyncpa [#allocation3], 1 }
 0x6bd   :  { %935 = vsyncpa [#allocation6], 1 }
 0x6be   :  { %936 = vsyncpa [#allocation4], 1 }

</bundles_post_ra>
